<compile_context>
chip_gen: v7x
topology: tpu7x:2x2x1
jax: 0.10.0
libtpu: 0.0.40
codegen_flags: <defaults>
</compile_context>

<pallas_src>
import jax
import jax.numpy as jnp
from jax.experimental import pallas as pl
from jax.experimental.pallas import tpu as pltpu


# ----------------------------- Pallas kernel -------------------------------

def qnet_kernel(s_ref, a_ref,
                w1s_ref, w1a_ref, b1_ref,
                w2_ref, b2_ref,
                w3_ref, b3_ref,
                q_ref):
    wdt = w1s_ref.dtype  # compute dtype of the MXU operands (f32 or bf16)

    # Fused first layer: [state | action] @ W1 == state @ W1s + action @ W1a.
    # Activations are cast to the weight dtype in-kernel (no extra HBM pass).
    h = jnp.dot(s_ref[...].astype(wdt), w1s_ref[...],
                preferred_element_type=jnp.float32)
    h = h + jnp.dot(a_ref[...].astype(wdt), w1a_ref[...],
                    preferred_element_type=jnp.float32)
    h = jnp.maximum(h + b1_ref[...], 0.0)                 # bias/ReLU in f32

    # Block-diagonal second layer (the two heads do not mix).
    h = jnp.dot(h.astype(wdt), w2_ref[...],
                preferred_element_type=jnp.float32) + b2_ref[...]
    h = jnp.maximum(h, 0.0)

    # Block-wise third layer -> (tm, 2) output: col 0 = q1, col 1 = q2.
    # TODO(synk): if output stores ever show in a profile, write a transposed
    # (2, tm) lane-dense tile instead (one free XLU transpose).
    q = jnp.dot(h.astype(wdt), w3_ref[...],
                preferred_element_type=jnp.float32) + b3_ref[...]
    q_ref[...] = q.astype(q_ref.dtype)


# ------------------------------- helpers ------------------------------------

def _round_up(x, m):
    return ((x + m - 1) // m) * m


def _vmem_capacity_bytes():
    """Physical VMEM per core; conservative fallback if the query is unavailable."""
    try:
        info = pltpu.get_tpu_info()
        cap = int(getattr(info, "vmem_capacity_bytes", 0) or 0)
        if cap > 0:
            return cap
    except Exception:
        pass
    return 64 << 20   # v7x has 64 MiB; v5e/v6e have 128 MiB — stay conservative


# ------------------------------- wrapper ------------------------------------

def qnetwork_forward(state, action, fused, *, tile_m=2048, min_split_rows=64):
    """Twin-Q forward. state: (B, S), action: (B, A). Returns (q1, q2), each (B, 1)."""
    B, S = state.shape
    A = action.shape[1]

    w1s, w1a, w2, w3 = fused["w1s"], fused["w1a"], fused["w2"], fused["w3"]
    b1, b2, b3 = fused["b1"], fused["b2"], fused["b3"]     # biases are fp32
    H2 = w1s.shape[1]                                      # 2 * hidden_dim

    # Sublane multiple for the batch-tiled arrays: 8 (f32), 16 (bf16), 32 (8-bit).
    in_item = min(jnp.dtype(state.dtype).itemsize, jnp.dtype(action.dtype).itemsize)
    sub = {4: 8, 2: 16, 1: 32}.get(in_item, 8)

    # Batch tile: large by default (step-overhead amortization), rounded to the
    # sublane multiple.  No host-side padding — Pallas masks the ragged tail.
    tm_cap = max(sub, _round_up(min(tile_m, B), sub))
    if tm_cap >= B:
        if B >= 2 * max(sub, min_split_rows):
            # Split into two tiles so ("parallel",) can shard the grid across
            # both TensorCores on v7x; negligible cost on single-core chips.
            tm = _round_up(pl.cdiv(B, 2), sub)
        else:
            tm = B      # single full-batch block (full-dim rule, any B legal)
    else:
        tm = tm_cap
    grid = (pl.cdiv(B, tm),)

    row_map = lambda i: (i, 0)      # batch-tiled operands
    fixed_map = lambda i: (0, 0)    # VMEM-resident weights / biases

    # TODO(synk): at hidden_dim where 2H > one MXU tile (128 v5e / 256 v6e+),
    # split W2/W3 back into per-head dots and consider pipeline_mode=
    # pl.Buffered(1) on the (then large) resident weight specs.
    in_specs = [
        pl.BlockSpec((tm, S), row_map),
        pl.BlockSpec((tm, A), row_map),
        pl.BlockSpec(w1s.shape, fixed_map),
        pl.BlockSpec(w1a.shape, fixed_map),
        pl.BlockSpec(b1.shape, fixed_map),
        pl.BlockSpec(w2.shape, fixed_map),
        pl.BlockSpec(b2.shape, fixed_map),
        pl.BlockSpec(w3.shape, fixed_map),
        pl.BlockSpec(b3.shape, fixed_map),
    ]
    out_specs = pl.BlockSpec((tm, 2), row_map)
    out_shape = jax.ShapeDtypeStruct((B, 2), jnp.float32)

    # VMEM limit ≈ double-buffered weights + activation tiles + f32 hidden
    # intermediates, with 2x safety; cap at half this generation's VMEM.
    weight_bytes = sum(int(x.size) * x.dtype.itemsize
                       for x in (w1s, w1a, b1, w2, b2, w3, b3))
    act_bytes = 2 * tm * (S + A) * in_item      # double-buffered input tiles
    out_bytes = 2 * tm * 2 * 4                  # double-buffered output tile
    inter_bytes = 2 * tm * H2 * 4               # f32 hidden activations
    need = 2 * weight_bytes + act_bytes + out_bytes + inter_bytes
    vmem_limit = int(min(max(2 * need, 8 << 20),
                         max(_vmem_capacity_bytes() // 2, 8 << 20)))

    q = pl.pallas_call(
        qnet_kernel,
        grid=grid,
        in_specs=in_specs,
        out_specs=out_specs,
        out_shape=out_shape,
        compiler_params=pltpu.CompilerParams(
            dimension_semantics=("parallel",),
            vmem_limit_bytes=vmem_limit),
    )(state, action, w1s, w1a, b1, w2, b2, w3, b3)

    return q[:, 0:1], q[:, 1:2]


# --------------------------- parameter handling ------------------------------

def orthogonal_init(key, out_dim, in_dim, gain):
    """Deterministic orthogonal init (matches nn.init.orthogonal_ semantics)."""
    a = jax.random.normal(key, (max(out_dim, in_dim), min(out_dim, in_dim)),
                          dtype=jnp.float32)
    q, r = jnp.linalg.qr(a)
    q = q * jnp.sign(jnp.diag(r))[None, :]
    if out_dim < in_dim:
        q = q.T
    return gain * q[:out_dim, :in_dim]


def init_qnetwork_params(key, state_dim, action_dim, hidden_dim):
    """Per-head params, pre-transposed to (in, out) weights and (1, out) biases."""
    gain = jnp.sqrt(2.0)
    in_dim = state_dim + action_dim
    keys = jax.random.split(key, 6)

    def linear(k, d_in, d_out):
        w = orthogonal_init(k, d_out, d_in, gain)          # torch shape (out, in)
        return w.T, jnp.zeros((1, d_out), jnp.float32)     # (in, out), (1, out)

    w1a, b1a = linear(keys[0], in_dim, hidden_dim)
    w2a, b2a = linear(keys[1], hidden_dim, hidden_dim)
    w3a, b3a = linear(keys[2], hidden_dim, 1)
    w1b, b1b = linear(keys[3], in_dim, hidden_dim)
    w2b, b2b = linear(keys[4], hidden_dim, hidden_dim)
    w3b, b3b = linear(keys[5], hidden_dim, 1)

    return dict(w1a=w1a, b1a=b1a, w2a=w2a, b2a=b2a, w3a=w3a, b3a=b3a,
                w1b=w1b, b1b=b1b, w2b=w2b, b2b=b2b, w3b=w3b, b3b=b3b)


def pack_qnetwork_params(p, state_dim, compute_dtype=jnp.bfloat16):
    """Fuse the two heads into wide / block-diagonal matrices — done ONCE.

    Weight matrices are stored pre-cast to `compute_dtype` (MXU operands);
    biases stay float32 (bias add / ReLU are done in f32 inside the kernel).
    """
    H = p["w2a"].shape[0]
    w1 = jnp.concatenate([p["w1a"], p["w1b"]], axis=1)          # (S+A, 2H)
    w1s, w1a_ = w1[:state_dim], w1[state_dim:]                  # (S,2H), (A,2H)
    b1 = jnp.concatenate([p["b1a"], p["b1b"]], axis=1)          # (1, 2H)
    z = jnp.zeros((H, H), jnp.float32)
    w2 = jnp.block([[p["w2a"], z], [z, p["w2b"]]])              # (2H, 2H)
    b2 = jnp.concatenate([p["b2a"], p["b2b"]], axis=1)          # (1, 2H)
    z1 = jnp.zeros((H, 1), jnp.float32)
    w3 = jnp.block([[p["w3a"], z1], [z1, p["w3b"]]])            # (2H, 2)
    b3 = jnp.concatenate([p["b3a"], p["b3b"]], axis=1)          # (1, 2)
    cd = jnp.dtype(compute_dtype)
    return dict(w1s=w1s.astype(cd), w1a=w1a_.astype(cd),
                w2=w2.astype(cd), w3=w3.astype(cd),
                b1=b1, b2=b2, b3=b3)


# --------------------------------- main --------------------------------------

if __name__ == "__main__":
    state_dim, action_dim, hidden_dim = 16, 8, 32
    batch = 8

    key = jax.random.PRNGKey(0)
    k_params, k_state, k_action = jax.random.split(key, 3)

    raw = init_qnetwork_params(k_params, state_dim, action_dim, hidden_dim)

    state = jax.random.normal(k_state, (batch, state_dim), dtype=jnp.float32)
    action = jax.random.normal(k_action, (batch, action_dim), dtype=jnp.float32)

    # Reference: plain-JAX twin-head forward with the UNFUSED per-head params.
    sa = jnp.concatenate([state, action], axis=1)

    def ref_head(w1, b1, w2, b2, w3, b3):
        h = jnp.maximum(sa @ w1 + b1, 0.0)
        h = jnp.maximum(h @ w2 + b2, 0.0)
        return h @ w3 + b3

    q1_ref = ref_head(raw["w1a"], raw["b1a"], raw["w2a"],
                      raw["b2a"], raw["w3a"], raw["b3a"])
    q2_ref = ref_head(raw["w1b"], raw["b1b"], raw["w2b"],
                      raw["b2b"], raw["w3b"], raw["b3b"])

    # ---- f32 path (tight numerical check) -----------------------------------
    fused_f32 = pack_qnetwork_params(raw, state_dim, compute_dtype=jnp.float32)
    q1, q2 = qnetwork_forward(state, action, fused_f32)
    jax.block_until_ready((q1, q2))
    assert q1.shape == (batch, 1) and q2.shape == (batch, 1)
    assert jnp.allclose(q1, q1_ref, atol=1e-5, rtol=1e-5)
    assert jnp.allclose(q2, q2_ref, atol=1e-5, rtol=1e-5)

    # ---- bf16 path (recommended production default for v6e/v7x) -------------
    fused_bf16 = pack_qnetwork_params(raw, state_dim)   # compute_dtype=bfloat16
    q1b, q2b = qnetwork_forward(state, action, fused_bf16)
    jax.block_until_ready((q1b, q2b))
    assert q1b.shape == (batch, 1) and q2b.shape == (batch, 1)
    assert jnp.allclose(q1b, q1_ref, atol=3e-1, rtol=5e-2)
    assert jnp.allclose(q2b, q2_ref, atol=3e-1, rtol=5e-2)

    print("KERNEL_OK")
</pallas_src>

<mosaic_0001>
module attributes {stable_mosaic.version = 11 : i64} {
  func.func @qnet_kernel(%arg0: i32, %arg1: memref<8x16xf32, #tpu.memory_space<vmem>>, %arg2: memref<8x8xf32, #tpu.memory_space<vmem>>, %arg3: memref<16x64xf32, #tpu.memory_space<vmem>>, %arg4: memref<8x64xf32, #tpu.memory_space<vmem>>, %arg5: memref<1x64xf32, #tpu.memory_space<vmem>>, %arg6: memref<64x64xf32, #tpu.memory_space<vmem>>, %arg7: memref<1x64xf32, #tpu.memory_space<vmem>>, %arg8: memref<64x2xf32, #tpu.memory_space<vmem>>, %arg9: memref<1x2xf32, #tpu.memory_space<vmem>>, %arg10: memref<8x2xf32, #tpu.memory_space<vmem>>) attributes {dimension_semantics = [#tpu.dimension_semantics<parallel>], iteration_bounds = array<i64: 1>, scalar_prefetch = 0 : i64, scratch_operands = 0 : i64, tpu.core_type = #tpu.core_type<tc>, window_params = [{transform_indices = @transform_0, window_bounds = array<i64: 8, 16>}, {transform_indices = @transform_1, window_bounds = array<i64: 8, 8>}, {pipeline_mode = #tpu.pipeline_mode<synchronous>, transform_indices = @transform_2, window_bounds = array<i64: 16, 64>}, {pipeline_mode = #tpu.pipeline_mode<synchronous>, transform_indices = @transform_3, window_bounds = array<i64: 8, 64>}, {pipeline_mode = #tpu.pipeline_mode<synchronous>, transform_indices = @transform_4, window_bounds = array<i64: 1, 64>}, {pipeline_mode = #tpu.pipeline_mode<synchronous>, transform_indices = @transform_5, window_bounds = array<i64: 64, 64>}, {pipeline_mode = #tpu.pipeline_mode<synchronous>, transform_indices = @transform_6, window_bounds = array<i64: 1, 64>}, {pipeline_mode = #tpu.pipeline_mode<synchronous>, transform_indices = @transform_7, window_bounds = array<i64: 64, 2>}, {pipeline_mode = #tpu.pipeline_mode<synchronous>, transform_indices = @transform_8, window_bounds = array<i64: 1, 2>}, {transform_indices = @transform_9, window_bounds = array<i64: 8, 2>}]} {
    %c0 = arith.constant 0 : index
    %c0_0 = arith.constant 0 : index
    %0 = vector.load %arg1[%c0, %c0_0] : memref<8x16xf32, #tpu.memory_space<vmem>>, vector<8x16xf32>
    %c0_1 = arith.constant 0 : index
    %c0_2 = arith.constant 0 : index
    %1 = vector.load %arg3[%c0_1, %c0_2] : memref<16x64xf32, #tpu.memory_space<vmem>>, vector<16x64xf32>
    %cst = arith.constant dense<0.000000e+00> : vector<8x64xf32>
    %2 = tpu.matmul %0, %1, %cst {dimension_numbers = #tpu.dot_dimension_numbers<[1], [0], [0], [1], [0, 0, 1, 1], [], []>} : vector<8x16xf32>, vector<16x64xf32>, vector<8x64xf32> -> vector<8x64xf32>
    %c0_3 = arith.constant 0 : index
    %c0_4 = arith.constant 0 : index
    %3 = vector.load %arg2[%c0_3, %c0_4] : memref<8x8xf32, #tpu.memory_space<vmem>>, vector<8x8xf32>
    %c0_5 = arith.constant 0 : index
    %c0_6 = arith.constant 0 : index
    %4 = vector.load %arg4[%c0_5, %c0_6] : memref<8x64xf32, #tpu.memory_space<vmem>>, vector<8x64xf32>
    %cst_7 = arith.constant dense<0.000000e+00> : vector<8x64xf32>
    %5 = tpu.matmul %3, %4, %cst_7 {dimension_numbers = #tpu.dot_dimension_numbers<[1], [0], [0], [1], [0, 0, 1, 1], [], []>} : vector<8x8xf32>, vector<8x64xf32>, vector<8x64xf32> -> vector<8x64xf32>
    %6 = arith.addf %2, %5 : vector<8x64xf32>
    %c0_8 = arith.constant 0 : index
    %c0_9 = arith.constant 0 : index
    %7 = vector.load %arg5[%c0_8, %c0_9] : memref<1x64xf32, #tpu.memory_space<vmem>>, vector<1x64xf32>
    %8 = vector.broadcast %7 : vector<1x64xf32> to vector<8x64xf32>
    %9 = arith.addf %6, %8 : vector<8x64xf32>
    %cst_10 = arith.constant 0.000000e+00 : f32
    %10 = vector.broadcast %cst_10 : f32 to vector<8x64xf32>
    %11 = arith.maximumf %9, %10 : vector<8x64xf32>
    %c0_11 = arith.constant 0 : index
    %c0_12 = arith.constant 0 : index
    %12 = vector.load %arg6[%c0_11, %c0_12] : memref<64x64xf32, #tpu.memory_space<vmem>>, vector<64x64xf32>
    %cst_13 = arith.constant dense<0.000000e+00> : vector<8x64xf32>
    %13 = tpu.matmul %11, %12, %cst_13 {dimension_numbers = #tpu.dot_dimension_numbers<[1], [0], [0], [1], [0, 0, 1, 1], [], []>} : vector<8x64xf32>, vector<64x64xf32>, vector<8x64xf32> -> vector<8x64xf32>
    %c0_14 = arith.constant 0 : index
    %c0_15 = arith.constant 0 : index
    %14 = vector.load %arg7[%c0_14, %c0_15] : memref<1x64xf32, #tpu.memory_space<vmem>>, vector<1x64xf32>
    %15 = vector.broadcast %14 : vector<1x64xf32> to vector<8x64xf32>
    %16 = arith.addf %13, %15 : vector<8x64xf32>
    %cst_16 = arith.constant 0.000000e+00 : f32
    %17 = vector.broadcast %cst_16 : f32 to vector<8x64xf32>
    %18 = arith.maximumf %16, %17 : vector<8x64xf32>
    %c0_17 = arith.constant 0 : index
    %c0_18 = arith.constant 0 : index
    %19 = vector.load %arg8[%c0_17, %c0_18] : memref<64x2xf32, #tpu.memory_space<vmem>>, vector<64x2xf32>
    %cst_19 = arith.constant dense<0.000000e+00> : vector<8x2xf32>
    %20 = tpu.matmul %18, %19, %cst_19 {dimension_numbers = #tpu.dot_dimension_numbers<[1], [0], [0], [1], [0, 0, 1, 1], [], []>} : vector<8x64xf32>, vector<64x2xf32>, vector<8x2xf32> -> vector<8x2xf32>
    %c0_20 = arith.constant 0 : index
    %c0_21 = arith.constant 0 : index
    %21 = vector.load %arg9[%c0_20, %c0_21] : memref<1x2xf32, #tpu.memory_space<vmem>>, vector<1x2xf32>
    %22 = vector.broadcast %21 : vector<1x2xf32> to vector<8x2xf32>
    %23 = arith.addf %20, %22 : vector<8x2xf32>
    %c0_22 = arith.constant 0 : index
    %c0_23 = arith.constant 0 : index
    %24 = vector.load %arg10[%c0_22, %c0_23] : memref<8x2xf32, #tpu.memory_space<vmem>>, vector<8x2xf32>
    tpu.vector_store %arg10[%c0_22, %c0_23], %23 {strides = array<i32>} : memref<8x2xf32, #tpu.memory_space<vmem>>, vector<8x2xf32>,
    return
  }
  func.func @transform_0(%arg0: i32) -> (i32, i32) {
    %c0_i32 = arith.constant 0 : i32
    %c0_i32_0 = arith.constant 0 : i32
    return %arg0, %c0_i32 : i32, i32
  }
  func.func @transform_1(%arg0: i32) -> (i32, i32) {
    %c0_i32 = arith.constant 0 : i32
    %c0_i32_0 = arith.constant 0 : i32
    return %arg0, %c0_i32 : i32, i32
  }
  func.func @transform_2(%arg0: i32) -> (i32, i32) {
    %c0_i32 = arith.constant 0 : i32
    %c0_i32_0 = arith.constant 0 : i32
    %c0_i32_1 = arith.constant 0 : i32
    return %c0_i32, %c0_i32_0 : i32, i32
  }
  func.func @transform_3(%arg0: i32) -> (i32, i32) {
    %c0_i32 = arith.constant 0 : i32
    %c0_i32_0 = arith.constant 0 : i32
    %c0_i32_1 = arith.constant 0 : i32
    return %c0_i32, %c0_i32_0 : i32, i32
  }
  func.func @transform_4(%arg0: i32) -> (i32, i32) {
    %c0_i32 = arith.constant 0 : i32
    %c0_i32_0 = arith.constant 0 : i32
    %c0_i32_1 = arith.constant 0 : i32
    return %c0_i32, %c0_i32_0 : i32, i32
  }
  func.func @transform_5(%arg0: i32) -> (i32, i32) {
    %c0_i32 = arith.constant 0 : i32
    %c0_i32_0 = arith.constant 0 : i32
    %c0_i32_1 = arith.constant 0 : i32
    return %c0_i32, %c0_i32_0 : i32, i32
  }
  func.func @transform_6(%arg0: i32) -> (i32, i32) {
    %c0_i32 = arith.constant 0 : i32
    %c0_i32_0 = arith.constant 0 : i32
    %c0_i32_1 = arith.constant 0 : i32
    return %c0_i32, %c0_i32_0 : i32, i32
  }
  func.func @transform_7(%arg0: i32) -> (i32, i32) {
    %c0_i32 = arith.constant 0 : i32
    %c0_i32_0 = arith.constant 0 : i32
    %c0_i32_1 = arith.constant 0 : i32
    return %c0_i32, %c0_i32_0 : i32, i32
  }
  func.func @transform_8(%arg0: i32) -> (i32, i32) {
    %c0_i32 = arith.constant 0 : i32
    %c0_i32_0 = arith.constant 0 : i32
    %c0_i32_1 = arith.constant 0 : i32
    return %c0_i32, %c0_i32_0 : i32, i32
  }
  func.func @transform_9(%arg0: i32) -> (i32, i32) {
    %c0_i32 = arith.constant 0 : i32
    %c0_i32_0 = arith.constant 0 : i32
    return %arg0, %c0_i32 : i32, i32
  }
}

</mosaic_0001>

<bundles_post_ra>
// kernel: tpu_custom_call.1
= control target key start
LH: loop header
LB: loop body
LE: loop exit
PB: predicated region body
PF: predicated region fallthrough
CT: control target
= control target key end

     0   :  { %14 = vsyncpa [#allocation3], 0  ;;  %s760_s0 = inlined_call_operand.hbm [shape: f32[8,16], index: 0, kind: input, shape index: {}]   ;;  %s761_s1 = inlined_call_operand.hbm [shape: f32[8,8], index: 1, kind: input, shape index: {}]   ;;  %s762_s2 = inlined_call_operand.vmem [shape: f32[16,64], index: 2, kind: input, shape index: {}]   ;;  %s763_s3 = inlined_call_operand.hbm [shape: f32[8,64], index: 3, kind: input, shape index: {}]   ;;  %s764_s4 = inlined_call_operand.vmem [shape: f32[1,64], index: 4, kind: input, shape index: {}]   ;;  %s765_s5 = inlined_call_operand.vmem [shape: f32[64,64], index: 5, kind: input, shape index: {}]   ;;  %s766_s6 = inlined_call_operand.vmem [shape: f32[1,64], index: 6, kind: input, shape index: {}]   ;;  %s767_s7 = inlined_call_operand.vmem [shape: f32[64,2], index: 7, kind: input, shape index: {}]   ;;  %s768_s8 = inlined_call_operand.vmem [shape: f32[1,2], index: 8, kind: input, shape index: {}]   ;;  %s769_s9 = inlined_call_operand.vmem [shape: f32[8,2], index: 9, kind: output, shape index: {}]  }
   0x1   :  { %15 = vsyncpa [#allocation5], 0  ;;  %s598_s30 = smov [#allocation4]   ;;  %s599_s11 = smov [#allocation2]  }
   0x2   :  { %s32_s10 = sshll.u32 %s598_s30, 4  ;;  %s22_s12 = sshll.u32 %s599_s11, 4  ;;  %s33_s10 = int_to_ptr.vmem [resolvable:$true] %s32_s10  ;;  %s23_s12 = int_to_ptr.vmem [resolvable:$true] %s22_s12 }
   0x3   :  { %s528_s15 = scalar_lea.hbm %s761_s1, 128 }
   0x4   :  { %p529_p0 = scmp.ne.s32.totalorder %s761_s1, %s528_s15  ;;  %p532_p1 = scmp.lt.u32.totalorder %s528_s15, %s761_s1 }
   0x6   :  { %p534_p2 = pnand %p532_p1, %p529_p0 }
   0x8   :  { %537 = shalt.err (!%p534_p2)
}
   0x9   :  { %s538_s20 = scalar_lea.vmem %s33_s10, 128  ;;  %p543_p4 = scmp.lt.s32.totalorder %s33_s10, %s33_s10 }
   0xa   :  { %p539_p3 = scmp.ne.s32.totalorder %s33_s10, %s538_s20  ;;  %p544_p5 = scmp.lt.s32.totalorder %s538_s20, %s538_s20 }
   0xc   :  { %p545_p6 = por %p544_p5, %p543_p4 }
   0xe   :  { %p546_p7 = pnand %p545_p6, %p539_p3 }
  0x10   :  { %549 = shalt.err (!%p546_p7)
}
  0x11   :  { %35 = dma.hbm_to_vmem [thread:$0]  %s761_s1, 128, %s33_s10, [#allocation5]  }
  0x12   :  { %s550_s25 = scalar_lea.hbm %s760_s0, 128 }
  0x13   :  { %p551_p8 = scmp.ne.s32.totalorder %s760_s0, %s550_s25  ;;  %p554_p9 = scmp.lt.u32.totalorder %s550_s25, %s760_s0 }
  0x15   :  { %p556_p10 = pnand %p554_p9, %p551_p8 }
  0x17   :  { %559 = shalt.err (!%p556_p10)
}
  0x18   :  { %s560_s30 = scalar_lea.vmem %s23_s12, 128  ;;  %p565_p12 = scmp.lt.s32.totalorder %s23_s12, %s23_s12 }
  0x19   :  { %p561_p11 = scmp.ne.s32.totalorder %s23_s12, %s560_s30  ;;  %p566_p13 = scmp.lt.s32.totalorder %s560_s30, %s560_s30 }
  0x1b   :  { %p567_p0 = por %p566_p13, %p565_p12 }
  0x1d   :  { %p568_p1 = pnand %p567_p0, %p561_p11 }
  0x1f   :  { %571 = shalt.err (!%p568_p1)
}
  0x20   :  { %25 = dma.hbm_to_vmem [thread:$0]  %s760_s0, 128, %s23_s12, [#allocation3]  }
  0x21   :  { %s600_s11 = smov [#allocation6]   ;;  %s572_s16 = scalar_lea.hbm %s763_s3, 128 }
  0x22   :  { %s44_s13 = sshll.u32 %s600_s11, 4  ;;  %p573_p2 = scmp.ne.s32.totalorder %s763_s3, %s572_s16  ;;  %s45_s13 = int_to_ptr.vmem [resolvable:$true] %s44_s13 }
  0x23   :  { %p576_p3 = scmp.lt.u32.totalorder %s572_s16, %s763_s3 }
  0x25   :  { %p578_p4 = pnand %p576_p3, %p573_p2 }
  0x27   :  { %581 = shalt.err (!%p578_p4)
}
  0x28   :  { %s582_s21 = scalar_lea.vmem %s45_s13, 128  ;;  %p587_p6 = scmp.lt.s32.totalorder %s45_s13, %s45_s13 }
  0x29   :  { %p583_p5 = scmp.ne.s32.totalorder %s45_s13, %s582_s21  ;;  %p588_p7 = scmp.lt.s32.totalorder %s582_s21, %s582_s21 }
  0x2b   :  { %p589_p8 = por %p588_p7, %p587_p6 }
  0x2d   :  { %p590_p9 = pnand %p589_p8, %p583_p5 }
  0x2f   :  { %593 = shalt.err (!%p590_p9)
}
  0x30   :  { %47 = dma.hbm_to_vmem [thread:$0]  %s763_s3, 128, %s45_s13, [#allocation5]  }
  0x31   :  { %594 = dma.done.wait [#allocation3], 128  }
  0x32   :  { %595 = vsyncadd [#allocation3], 4294967168 }
  0x33   :  { %596 = dma.done.wait [#allocation5], 256  }
  0x34   :  { %597 = vsyncadd [#allocation5], 4294967040  ;;  %v601_v0 = vmov 0.0|0.0   ;;  %v602_v1 = vmov 0.0   ;;  %vm603_vm0 = vmmov 0   ;;  %vm72_vm1 = vcmask 64512  }
  0x35   :  { %495 = vmatprep.subr.bf16.mxu1 %v601_v0  ;;  %445 = vmatprep.subr.mxu0 %v602_v1  ;;  %v68_v2 = vld [vmem:[%s762_s2] sm:$0xff]  ;;  %v69_v3 = vld [vmem:[%s762_s2 + $0x8] sm:$0xff]  ;;  %v71_v4 = vld [vmem:[#allocation6] sm:$0xff]  ;;  %vm146_vm2 = vcmask 130048   ;;  %vm244_vm3 = vcmask 523264   ;;  %vm407_vm4 = vcmask 15360  }
  0x36   :  { %447 = vmatprep.mubr.msk.f32.mxu0 %vm603_vm0, %v602_v1  ;;  %454 = vmatprep.mubr.msk.f32.mxu1 %vm603_vm0, %v602_v1  ;;  %v496_v5 = vpack.c.bf16 %v69_v3, %v68_v2  ;;  %v70_v6 = vld [vmem:[#allocation4] sm:$0xff]  ;;  %v229_v7 = vld [vmem:[%s765_s5] sm:$0xff]  ;;  %v231_v9 = vld [vmem:[%s765_s5 + $0x10] sm:$0xff] }
  0x37   :  { %446 = vmatpush3.msra.mxu0 %v71_v4  ;;  %v230_v8 = vld [vmem:[%s765_s5 + $0x8] sm:$0xff]  ;;  %v232_v10 = vld [vmem:[%s765_s5 + $0x18] sm:$0xff]  ;;  %v67_v11 = vld [vmem:[#allocation2] sm:$0xff] }
  0x38   :  { %448 = vmatmul.mubr.msk.f32.vlgmr.msra.gmra.mrb[0].mxu0 %vm72_vm1, %v70_v6  ;;  %498 = vmatprep.subr.bf16.mxu0 %v601_v0  ;;  %v499_v12 = vpack.c.bf16 %v230_v8, %v229_v7  ;;  %v502_v13 = vpack.c.bf16 %v232_v10, %v231_v9  ;;  %v233_v14 = vld [vmem:[%s765_s5 + $0x20] sm:$0xff]  ;;  %v234_v15 = vld [vmem:[%s765_s5 + $0x28] sm:$0xff]  ;;  %v235_v17 = vld [vmem:[%s765_s5 + $0x30] sm:$0xff] }
  0x39   :  { %497 = vmatpush3.bf16.msra.mxu1 %v496_v5  ;;  %473 = vmatprep.mubr.msk.f32.mxu0 %vm603_vm0, %v602_v1  ;;  %v505_v16 = vpack.c.bf16 %v234_v15, %v233_v14  ;;  %v236_v18 = vld [vmem:[%s765_s5 + $0x38] sm:$0xff]  ;;  %v319_v20 = vld [vmem:[%s767_s7] sm:$0xff]  ;;  %v320_v21 = vld [vmem:[%s767_s7 + $0x8] sm:$0xff] }
  0x3a   :  { %510 = vmatprep.subr.bf16.mxu1 %v601_v0  ;;  %500 = vmatpush3.bf16.msra.mxu0 %v499_v12  ;;  %v508_v19 = vpack.c.bf16 %v236_v18, %v235_v17  ;;  %v321_v22 = vld [vmem:[%s767_s7 + $0x10] sm:$0xff]  ;;  %v511_v23 = vpack.c.bf16 %v320_v21, %v319_v20  ;;  %v322_v24 = vld [vmem:[%s767_s7 + $0x18] sm:$0xff]  ;;  %v323_v26 = vld [vmem:[%s767_s7 + $0x20] sm:$0xff] }
  0x3b   :  { %501 = vmatprep.subr.bf16.mxu0 %v601_v0  ;;  %v514_v25 = vpack.c.bf16 %v322_v24, %v321_v22  ;;  %v324_v27 = vld [vmem:[%s767_s7 + $0x28] sm:$0xff]  ;;  %v417_v32 = vld [vmem:[%s764_s4] ss:$0 sm:$0xff]  ;;  %v325_v37 = vld [vmem:[%s767_s7 + $0x30] sm:$0xff] }
  0x3c   :  { %455 = vmatmul.mubr.msk.f32.vlgmr.msra.gmra.mrb[0].mxu1 %vm146_vm2, %v67_v11  ;;  %v517_v28 = vpack.c.bf16 %v324_v27, %v323_v26  ;;  %v326_v38 = vld [vmem:[%s767_s7 + $0x38] sm:$0xff]  ;;  %v418_v40 = vld [vmem:[%s766_s6] ss:$0 sm:$0xff] }
  0x3d   :  { %492 = vmatprep.mubr.msk.f32.mxu1 %vm603_vm0, %v602_v1  ;;  %512 = vmatpush3.bf16.msra.mxu1 %v511_v23  ;;  %v520_v39 = vpack.c.bf16 %v326_v38, %v325_v37  ;;  %v420_v45 = vld [vmem:[%s768_s8] ss:$0 sm:$0xff] }
  0x3e   :  { %503 = vmatpush3.bf16.msra.mxu0 %v502_v13  ;;  %513 = vmatprep.subr.bf16.mxu1 %v601_v0 }
  0x3f   :  { %504 = vmatprep.subr.bf16.mxu0 %v601_v0 }
  0x41   :  { %515 = vmatpush3.bf16.msra.mxu1 %v514_v25 }
  0x42   :  { %506 = vmatpush3.bf16.msra.mxu0 %v505_v16  ;;  %516 = vmatprep.subr.bf16.mxu1 %v601_v0 }
  0x43   :  { %507 = vmatprep.subr.bf16.mxu0 %v601_v0 }
  0x45   :  { %518 = vmatpush3.bf16.msra.mxu1 %v517_v28 }
  0x46   :  { %509 = vmatpush3.bf16.msra.mxu0 %v508_v19  ;;  %519 = vmatprep.subr.bf16.mxu1 %v601_v0 }
  0x49   :  { %521 = vmatpush3.bf16.msra.mxu1 %v520_v39 }
 0x10b   :  { %v142_v29 = vpop.f32.mrb[0].mxu0 }
 0x10c   :  { %v449_v30 = vpop.f32.mrb[1].mxu0 }
 0x10f   :  { %v216_v31 = vpop.f32.mrb[0].mxu1 }
 0x110   :  { %v217_v33 = vadd.f32 %v216_v31, %v142_v29  ;;  %v456_v34 = vpop.f32.mrb[1].mxu1 }
 0x112   :  { %v227_v35 = vadd.f32 %v417_v32, %v217_v33 }
 0x114   :  { %v228_v36 = vmax.f32 %v227_v35, 0.0 }
 0x116   :  { %474 = vmatmul.mubr.msk.f32.vlgmr.msra.gmra.mrb[2].mxu0 %vm244_vm3, %v228_v36 }
 0x1e9   :  { %v314_v41 = vpop.f32.mrb[2].mxu0 }
 0x1ea   :  { %v315_v42 = vadd.f32 %v418_v40, %v314_v41  ;;  %v475_v43 = vpop.f32.mrb[3].mxu0 }
 0x1ec   :  { %v318_v44 = vmax.f32 %v315_v42, 0.0 }
 0x1ee   :  { %493 = vmatmul.mubr.msk.f32.vlgmr.msra.gmra.mrb[2].mxu1 %vm244_vm3, %v318_v44 }
 0x2c1   :  { %v403_v46 = vpop.f32.mrb[2].mxu1 }
 0x2c2   :  { %v404_v47 = vadd.f32 %v420_v45, %v403_v46  ;;  %v494_v48 = vpop.f32.mrb[3].mxu1 }
 0x2c4   :  { %408 = vst.msk [vmem:[%s769_s9] sm:$0xff] %vm407_vm4, %v404_v47 }
 0x2c5   :  { %413 = vsyncpa [#allocation3], 1 }
 0x2c6   :  { %414 = vsyncpa [#allocation5], 1 }

</bundles_post_ra>
